<compile_context>
chip_gen: v5e
topology: v5e:2x2
jax: 0.10.0
libtpu: 0.0.40
codegen_flags: <defaults>
</compile_context>

<pallas_src>
import jax
import jax.numpy as jnp
from jax.experimental import pallas as pl
from jax.experimental.pallas import tpu as pltpu


def _spatio_conv_kernel(x_ref, at_ref, wt_ref, b_ref, o_ref):
    # x_ref : (C, t_tile, N) f32   -- one (batch, time-tile) slab, nodes on lanes
    # at_ref: (N, N)         bf16  -- A_norm^T (grid-invariant, VMEM-resident)
    # wt_ref: (C, C)         f32   -- W^T (grid-invariant, tiny)
    # b_ref : (C, 1)         f32   -- bias column (grid-invariant)
    # o_ref : (C, t_tile, N) bf16
    a_t = at_ref[...]
    w_t = wt_ref[...]
    bias = b_ref[...]
    t_tile = x_ref.shape[1]
    for t in range(t_tile):                        # static, unrolled
        # bf16 cast happens in-kernel (no extra wrapper HBM pass over x).
        x_t = x_ref[:, t, :].astype(a_t.dtype)     # (C, N)
        # Adjacency aggregation: z[c, n] = sum_m x[c, m] * A[n, m]  (lane-dense K=N)
        z = jnp.dot(x_t, a_t, preferred_element_type=jnp.float32)
        # Channel mix (no kron): y[o, n] = sum_c W[c, o] * z[c, n]  (K = C), in f32.
        y = jnp.dot(w_t, z, preferred_element_type=jnp.float32)
        # torch applies relu twice (GraphConv activation + outer relu); idempotent.
        o_ref[:, t, :] = jnp.maximum(y + bias, 0.0).astype(o_ref.dtype)


def spatio_conv_layer(x, a_norm, weight, bias, *,
                      compute_dtype=jnp.bfloat16, out_dtype=jnp.bfloat16):
    """STGCN SpatioConvLayer forward.

    x:      (B, C, T, N) float32 (nodes last).
    a_norm: (N, N) normalized adjacency D^-1/2 A D^-1/2 (row = destination).
    weight: (C, C) GraphConv weight (in_feats, out_feats).
    bias:   (C,)   GraphConv bias.
    Returns (B, C, T, N) in `out_dtype` (bf16 by default).
    """
    B, C, T, N = x.shape
    # Time tile: a multiple of 8 (sublane granule) when possible so the
    # (8, 128)-rule on the last two block dims is satisfied; otherwise full T.
    t_tile = 8 if T % 8 == 0 else T
    n_t = T // t_tile

    # ---- wrapper-side prep: NO extra passes over x (leading-dim merge is free) ----
    x_r = x.reshape(B * C, T, N)
    a_t = a_norm.T.astype(compute_dtype)            # (N, N), z = X @ A^T
    w_t = weight.T.astype(jnp.float32)              # (C_out, C_in), tiny -> keep f32
    bias_col = bias.astype(jnp.float32).reshape(C, 1)

    out = pl.pallas_call(
        _spatio_conv_kernel,
        out_shape=jax.ShapeDtypeStruct((B * C, T, N), out_dtype),
        grid=(B, n_t),
        in_specs=[
            # x: one (C, t_tile, N) slab per grid step.
            pl.BlockSpec((C, t_tile, N), lambda b, tt: (b, tt, 0)),
            # Grid-invariant operands: constant index_maps -> no re-DMA.
            pl.BlockSpec((N, N), lambda b, tt: (0, 0)),
            pl.BlockSpec((C, C), lambda b, tt: (0, 0)),
            pl.BlockSpec((C, 1), lambda b, tt: (0, 0)),
        ],
        out_specs=pl.BlockSpec((C, t_tile, N), lambda b, tt: (b, tt, 0)),
        compiler_params=pltpu.CompilerParams(
            dimension_semantics=("parallel", "parallel")),   # B and T tiles independent
    )(x_r, a_t, w_t, bias_col)

    # Free reshape back to the native layout; nothing to slice off.
    return out.reshape(B, C, T, N)


def _reference(x, a_norm, weight, bias):
    # Pure-JAX float32 reference of GraphConv(norm='both') + relu, native layout.
    z = jnp.einsum("nm,bctm->bctn", a_norm, x)       # aggregate over source nodes
    y = jnp.einsum("co,bctn->botn", weight, z)       # channel mix
    y = y + bias[None, :, None, None]
    return jnp.maximum(y, 0.0)


def _build_normalized_adjacency(n):
    # Deterministic synthetic graph: ring + self-loops, norm='both':
    # A_norm = D^{-1/2} A D^{-1/2}
    idx = jnp.arange(n)
    A = jnp.zeros((n, n), jnp.float32)
    A = A.at[idx, idx].set(1.0)
    A = A.at[idx, (idx + 1) % n].set(1.0)
    A = A.at[idx, (idx - 1) % n].set(1.0)
    deg = A.sum(axis=1)
    d_inv_sqrt = 1.0 / jnp.sqrt(deg)
    return A * d_inv_sqrt[:, None] * d_inv_sqrt[None, :]


if __name__ == "__main__":
    B, C, T, N = 2, 4, 16, 16
    key = jax.random.PRNGKey(0)
    kx, kw, kb = jax.random.split(key, 3)

    x = jax.random.normal(kx, (B, C, T, N), dtype=jnp.float32)
    stdv = 1.0 / (C ** 0.5)
    weight = jax.random.uniform(kw, (C, C), dtype=jnp.float32,
                                minval=-stdv, maxval=stdv)
    bias = 0.1 * jax.random.normal(kb, (C,), dtype=jnp.float32)
    a_norm = _build_normalized_adjacency(N)

    out = spatio_conv_layer(x, a_norm, weight, bias)
    out = jax.block_until_ready(out)

    ref = _reference(x, a_norm, weight, bias)
    assert out.shape == (B, C, T, N)
    # bf16 adjacency matmul + bf16 output store -> loosened tolerance vs f32 ref.
    err = jnp.max(jnp.abs(out.astype(jnp.float32) - ref))
    assert jnp.allclose(out.astype(jnp.float32), ref, atol=3e-2, rtol=3e-2), float(err)
    print("KERNEL_OK")
</pallas_src>

<mosaic_0001>
module attributes {stable_mosaic.version = 11 : i64} {
  func.func @_spatio_conv_kernel(%arg0: i32, %arg1: i32, %arg2: memref<4x8x16xf32, #tpu.memory_space<vmem>>, %arg3: memref<16x16xbf16, #tpu.memory_space<vmem>>, %arg4: memref<4x4xf32, #tpu.memory_space<vmem>>, %arg5: memref<4x1xf32, #tpu.memory_space<vmem>>, %arg6: memref<4x8x16xbf16, #tpu.memory_space<vmem>>) attributes {dimension_semantics = [#tpu.dimension_semantics<parallel>, #tpu.dimension_semantics<parallel>], iteration_bounds = array<i64: 2, 2>, scalar_prefetch = 0 : i64, scratch_operands = 0 : i64, tpu.core_type = #tpu.core_type<tc>, window_params = [{transform_indices = @transform_0, window_bounds = array<i64: 4, 8, 16>}, {pipeline_mode = #tpu.pipeline_mode<synchronous>, transform_indices = @transform_1, window_bounds = array<i64: 16, 16>}, {pipeline_mode = #tpu.pipeline_mode<synchronous>, transform_indices = @transform_2, window_bounds = array<i64: 4, 4>}, {pipeline_mode = #tpu.pipeline_mode<synchronous>, transform_indices = @transform_3, window_bounds = array<i64: 4, 1>}, {transform_indices = @transform_4, window_bounds = array<i64: 4, 8, 16>}]} {
    %c0 = arith.constant 0 : index
    %c0_0 = arith.constant 0 : index
    %0 = vector.load %arg3[%c0, %c0_0] : memref<16x16xbf16, #tpu.memory_space<vmem>>, vector<16x16xbf16>
    %c0_1 = arith.constant 0 : index
    %c0_2 = arith.constant 0 : index
    %1 = vector.load %arg4[%c0_1, %c0_2] : memref<4x4xf32, #tpu.memory_space<vmem>>, vector<4x4xf32>
    %c0_3 = arith.constant 0 : index
    %c0_4 = arith.constant 0 : index
    %2 = vector.load %arg5[%c0_3, %c0_4] : memref<4x1xf32, #tpu.memory_space<vmem>>, vector<4x1xf32>
    %c0_5 = arith.constant 0 : index
    %c0_6 = arith.constant 0 : index
    %c0_7 = arith.constant 0 : index
    %3 = vector.load %arg2[%c0_5, %c0_6, %c0_7] : memref<4x8x16xf32, #tpu.memory_space<vmem>>, vector<4x1x16xf32>
    %4 = vector.shape_cast %3 : vector<4x1x16xf32> to vector<4x16xf32>
    %5 = arith.truncf %4 : vector<4x16xf32> to vector<4x16xbf16>
    %cst = arith.constant dense<0.000000e+00> : vector<4x16xf32>
    %6 = tpu.matmul %5, %0, %cst {dimension_numbers = #tpu.dot_dimension_numbers<[1], [0], [0], [1], [0, 0, 1, 1], [], []>} : vector<4x16xbf16>, vector<16x16xbf16>, vector<4x16xf32> -> vector<4x16xf32>
    %cst_8 = arith.constant dense<0.000000e+00> : vector<4x16xf32>
    %7 = tpu.matmul %1, %6, %cst_8 {dimension_numbers = #tpu.dot_dimension_numbers<[1], [0], [0], [1], [0, 0, 1, 1], [], []>} : vector<4x4xf32>, vector<4x16xf32>, vector<4x16xf32> -> vector<4x16xf32>
    %8 = vector.broadcast %2 : vector<4x1xf32> to vector<4x16xf32>
    %9 = arith.addf %7, %8 : vector<4x16xf32>
    %cst_9 = arith.constant 0.000000e+00 : f32
    %10 = vector.broadcast %cst_9 : f32 to vector<4x16xf32>
    %11 = arith.maximumf %9, %10 : vector<4x16xf32>
    %12 = arith.truncf %11 : vector<4x16xf32> to vector<4x16xbf16>
    %c0_10 = arith.constant 0 : index
    %c0_11 = arith.constant 0 : index
    %c0_12 = arith.constant 0 : index
    %13 = vector.load %arg6[%c0_10, %c0_11, %c0_12] : memref<4x8x16xbf16, #tpu.memory_space<vmem>>, vector<4x1x16xbf16>
    %14 = vector.shape_cast %13 : vector<4x1x16xbf16> to vector<4x16xbf16>
    %15 = vector.shape_cast %12 : vector<4x16xbf16> to vector<4x1x16xbf16>
    tpu.vector_store %arg6[%c0_10, %c0_11, %c0_12], %15 {strides = array<i32>} : memref<4x8x16xbf16, #tpu.memory_space<vmem>>, vector<4x1x16xbf16>,
    %c0_13 = arith.constant 0 : index
    %c1 = arith.constant 1 : index
    %c0_14 = arith.constant 0 : index
    %16 = vector.load %arg2[%c0_13, %c1, %c0_14] : memref<4x8x16xf32, #tpu.memory_space<vmem>>, vector<4x1x16xf32>
    %17 = vector.shape_cast %16 : vector<4x1x16xf32> to vector<4x16xf32>
    %18 = arith.truncf %17 : vector<4x16xf32> to vector<4x16xbf16>
    %cst_15 = arith.constant dense<0.000000e+00> : vector<4x16xf32>
    %19 = tpu.matmul %18, %0, %cst_15 {dimension_numbers = #tpu.dot_dimension_numbers<[1], [0], [0], [1], [0, 0, 1, 1], [], []>} : vector<4x16xbf16>, vector<16x16xbf16>, vector<4x16xf32> -> vector<4x16xf32>
    %cst_16 = arith.constant dense<0.000000e+00> : vector<4x16xf32>
    %20 = tpu.matmul %1, %19, %cst_16 {dimension_numbers = #tpu.dot_dimension_numbers<[1], [0], [0], [1], [0, 0, 1, 1], [], []>} : vector<4x4xf32>, vector<4x16xf32>, vector<4x16xf32> -> vector<4x16xf32>
    %21 = vector.broadcast %2 : vector<4x1xf32> to vector<4x16xf32>
    %22 = arith.addf %20, %21 : vector<4x16xf32>
    %cst_17 = arith.constant 0.000000e+00 : f32
    %23 = vector.broadcast %cst_17 : f32 to vector<4x16xf32>
    %24 = arith.maximumf %22, %23 : vector<4x16xf32>
    %25 = arith.truncf %24 : vector<4x16xf32> to vector<4x16xbf16>
    %c0_18 = arith.constant 0 : index
    %c1_19 = arith.constant 1 : index
    %c0_20 = arith.constant 0 : index
    %26 = vector.load %arg6[%c0_18, %c1_19, %c0_20] : memref<4x8x16xbf16, #tpu.memory_space<vmem>>, vector<4x1x16xbf16>
    %27 = vector.shape_cast %26 : vector<4x1x16xbf16> to vector<4x16xbf16>
    %28 = vector.shape_cast %25 : vector<4x16xbf16> to vector<4x1x16xbf16>
    tpu.vector_store %arg6[%c0_18, %c1_19, %c0_20], %28 {strides = array<i32>} : memref<4x8x16xbf16, #tpu.memory_space<vmem>>, vector<4x1x16xbf16>,
    %c0_21 = arith.constant 0 : index
    %c2 = arith.constant 2 : index
    %c0_22 = arith.constant 0 : index
    %29 = vector.load %arg2[%c0_21, %c2, %c0_22] : memref<4x8x16xf32, #tpu.memory_space<vmem>>, vector<4x1x16xf32>
    %30 = vector.shape_cast %29 : vector<4x1x16xf32> to vector<4x16xf32>
    %31 = arith.truncf %30 : vector<4x16xf32> to vector<4x16xbf16>
    %cst_23 = arith.constant dense<0.000000e+00> : vector<4x16xf32>
    %32 = tpu.matmul %31, %0, %cst_23 {dimension_numbers = #tpu.dot_dimension_numbers<[1], [0], [0], [1], [0, 0, 1, 1], [], []>} : vector<4x16xbf16>, vector<16x16xbf16>, vector<4x16xf32> -> vector<4x16xf32>
    %cst_24 = arith.constant dense<0.000000e+00> : vector<4x16xf32>
    %33 = tpu.matmul %1, %32, %cst_24 {dimension_numbers = #tpu.dot_dimension_numbers<[1], [0], [0], [1], [0, 0, 1, 1], [], []>} : vector<4x4xf32>, vector<4x16xf32>, vector<4x16xf32> -> vector<4x16xf32>
    %34 = vector.broadcast %2 : vector<4x1xf32> to vector<4x16xf32>
    %35 = arith.addf %33, %34 : vector<4x16xf32>
    %cst_25 = arith.constant 0.000000e+00 : f32
    %36 = vector.broadcast %cst_25 : f32 to vector<4x16xf32>
    %37 = arith.maximumf %35, %36 : vector<4x16xf32>
    %38 = arith.truncf %37 : vector<4x16xf32> to vector<4x16xbf16>
    %c0_26 = arith.constant 0 : index
    %c2_27 = arith.constant 2 : index
    %c0_28 = arith.constant 0 : index
    %39 = vector.load %arg6[%c0_26, %c2_27, %c0_28] : memref<4x8x16xbf16, #tpu.memory_space<vmem>>, vector<4x1x16xbf16>
    %40 = vector.shape_cast %39 : vector<4x1x16xbf16> to vector<4x16xbf16>
    %41 = vector.shape_cast %38 : vector<4x16xbf16> to vector<4x1x16xbf16>
    tpu.vector_store %arg6[%c0_26, %c2_27, %c0_28], %41 {strides = array<i32>} : memref<4x8x16xbf16, #tpu.memory_space<vmem>>, vector<4x1x16xbf16>,
    %c0_29 = arith.constant 0 : index
    %c3 = arith.constant 3 : index
    %c0_30 = arith.constant 0 : index
    %42 = vector.load %arg2[%c0_29, %c3, %c0_30] : memref<4x8x16xf32, #tpu.memory_space<vmem>>, vector<4x1x16xf32>
    %43 = vector.shape_cast %42 : vector<4x1x16xf32> to vector<4x16xf32>
    %44 = arith.truncf %43 : vector<4x16xf32> to vector<4x16xbf16>
    %cst_31 = arith.constant dense<0.000000e+00> : vector<4x16xf32>
    %45 = tpu.matmul %44, %0, %cst_31 {dimension_numbers = #tpu.dot_dimension_numbers<[1], [0], [0], [1], [0, 0, 1, 1], [], []>} : vector<4x16xbf16>, vector<16x16xbf16>, vector<4x16xf32> -> vector<4x16xf32>
    %cst_32 = arith.constant dense<0.000000e+00> : vector<4x16xf32>
    %46 = tpu.matmul %1, %45, %cst_32 {dimension_numbers = #tpu.dot_dimension_numbers<[1], [0], [0], [1], [0, 0, 1, 1], [], []>} : vector<4x4xf32>, vector<4x16xf32>, vector<4x16xf32> -> vector<4x16xf32>
    %47 = vector.broadcast %2 : vector<4x1xf32> to vector<4x16xf32>
    %48 = arith.addf %46, %47 : vector<4x16xf32>
    %cst_33 = arith.constant 0.000000e+00 : f32
    %49 = vector.broadcast %cst_33 : f32 to vector<4x16xf32>
    %50 = arith.maximumf %48, %49 : vector<4x16xf32>
    %51 = arith.truncf %50 : vector<4x16xf32> to vector<4x16xbf16>
    %c0_34 = arith.constant 0 : index
    %c3_35 = arith.constant 3 : index
    %c0_36 = arith.constant 0 : index
    %52 = vector.load %arg6[%c0_34, %c3_35, %c0_36] : memref<4x8x16xbf16, #tpu.memory_space<vmem>>, vector<4x1x16xbf16>
    %53 = vector.shape_cast %52 : vector<4x1x16xbf16> to vector<4x16xbf16>
    %54 = vector.shape_cast %51 : vector<4x16xbf16> to vector<4x1x16xbf16>
    tpu.vector_store %arg6[%c0_34, %c3_35, %c0_36], %54 {strides = array<i32>} : memref<4x8x16xbf16, #tpu.memory_space<vmem>>, vector<4x1x16xbf16>,
    %c0_37 = arith.constant 0 : index
    %c4 = arith.constant 4 : index
    %c0_38 = arith.constant 0 : index
    %55 = vector.load %arg2[%c0_37, %c4, %c0_38] : memref<4x8x16xf32, #tpu.memory_space<vmem>>, vector<4x1x16xf32>
    %56 = vector.shape_cast %55 : vector<4x1x16xf32> to vector<4x16xf32>
    %57 = arith.truncf %56 : vector<4x16xf32> to vector<4x16xbf16>
    %cst_39 = arith.constant dense<0.000000e+00> : vector<4x16xf32>
    %58 = tpu.matmul %57, %0, %cst_39 {dimension_numbers = #tpu.dot_dimension_numbers<[1], [0], [0], [1], [0, 0, 1, 1], [], []>} : vector<4x16xbf16>, vector<16x16xbf16>, vector<4x16xf32> -> vector<4x16xf32>
    %cst_40 = arith.constant dense<0.000000e+00> : vector<4x16xf32>
    %59 = tpu.matmul %1, %58, %cst_40 {dimension_numbers = #tpu.dot_dimension_numbers<[1], [0], [0], [1], [0, 0, 1, 1], [], []>} : vector<4x4xf32>, vector<4x16xf32>, vector<4x16xf32> -> vector<4x16xf32>
    %60 = vector.broadcast %2 : vector<4x1xf32> to vector<4x16xf32>
    %61 = arith.addf %59, %60 : vector<4x16xf32>
    %cst_41 = arith.constant 0.000000e+00 : f32
    %62 = vector.broadcast %cst_41 : f32 to vector<4x16xf32>
    %63 = arith.maximumf %61, %62 : vector<4x16xf32>
    %64 = arith.truncf %63 : vector<4x16xf32> to vector<4x16xbf16>
    %c0_42 = arith.constant 0 : index
    %c4_43 = arith.constant 4 : index
    %c0_44 = arith.constant 0 : index
    %65 = vector.load %arg6[%c0_42, %c4_43, %c0_44] : memref<4x8x16xbf16, #tpu.memory_space<vmem>>, vector<4x1x16xbf16>
    %66 = vector.shape_cast %65 : vector<4x1x16xbf16> to vector<4x16xbf16>
    %67 = vector.shape_cast %64 : vector<4x16xbf16> to vector<4x1x16xbf16>
    tpu.vector_store %arg6[%c0_42, %c4_43, %c0_44], %67 {strides = array<i32>} : memref<4x8x16xbf16, #tpu.memory_space<vmem>>, vector<4x1x16xbf16>,
    %c0_45 = arith.constant 0 : index
    %c5 = arith.constant 5 : index
    %c0_46 = arith.constant 0 : index
    %68 = vector.load %arg2[%c0_45, %c5, %c0_46] : memref<4x8x16xf32, #tpu.memory_space<vmem>>, vector<4x1x16xf32>
    %69 = vector.shape_cast %68 : vector<4x1x16xf32> to vector<4x16xf32>
    %70 = arith.truncf %69 : vector<4x16xf32> to vector<4x16xbf16>
    %cst_47 = arith.constant dense<0.000000e+00> : vector<4x16xf32>
    %71 = tpu.matmul %70, %0, %cst_47 {dimension_numbers = #tpu.dot_dimension_numbers<[1], [0], [0], [1], [0, 0, 1, 1], [], []>} : vector<4x16xbf16>, vector<16x16xbf16>, vector<4x16xf32> -> vector<4x16xf32>
    %cst_48 = arith.constant dense<0.000000e+00> : vector<4x16xf32>
    %72 = tpu.matmul %1, %71, %cst_48 {dimension_numbers = #tpu.dot_dimension_numbers<[1], [0], [0], [1], [0, 0, 1, 1], [], []>} : vector<4x4xf32>, vector<4x16xf32>, vector<4x16xf32> -> vector<4x16xf32>
    %73 = vector.broadcast %2 : vector<4x1xf32> to vector<4x16xf32>
    %74 = arith.addf %72, %73 : vector<4x16xf32>
    %cst_49 = arith.constant 0.000000e+00 : f32
    %75 = vector.broadcast %cst_49 : f32 to vector<4x16xf32>
    %76 = arith.maximumf %74, %75 : vector<4x16xf32>
    %77 = arith.truncf %76 : vector<4x16xf32> to vector<4x16xbf16>
    %c0_50 = arith.constant 0 : index
    %c5_51 = arith.constant 5 : index
    %c0_52 = arith.constant 0 : index
    %78 = vector.load %arg6[%c0_50, %c5_51, %c0_52] : memref<4x8x16xbf16, #tpu.memory_space<vmem>>, vector<4x1x16xbf16>
    %79 = vector.shape_cast %78 : vector<4x1x16xbf16> to vector<4x16xbf16>
    %80 = vector.shape_cast %77 : vector<4x16xbf16> to vector<4x1x16xbf16>
    tpu.vector_store %arg6[%c0_50, %c5_51, %c0_52], %80 {strides = array<i32>} : memref<4x8x16xbf16, #tpu.memory_space<vmem>>, vector<4x1x16xbf16>,
    %c0_53 = arith.constant 0 : index
    %c6 = arith.constant 6 : index
    %c0_54 = arith.constant 0 : index
    %81 = vector.load %arg2[%c0_53, %c6, %c0_54] : memref<4x8x16xf32, #tpu.memory_space<vmem>>, vector<4x1x16xf32>
    %82 = vector.shape_cast %81 : vector<4x1x16xf32> to vector<4x16xf32>
    %83 = arith.truncf %82 : vector<4x16xf32> to vector<4x16xbf16>
    %cst_55 = arith.constant dense<0.000000e+00> : vector<4x16xf32>
    %84 = tpu.matmul %83, %0, %cst_55 {dimension_numbers = #tpu.dot_dimension_numbers<[1], [0], [0], [1], [0, 0, 1, 1], [], []>} : vector<4x16xbf16>, vector<16x16xbf16>, vector<4x16xf32> -> vector<4x16xf32>
    %cst_56 = arith.constant dense<0.000000e+00> : vector<4x16xf32>
    %85 = tpu.matmul %1, %84, %cst_56 {dimension_numbers = #tpu.dot_dimension_numbers<[1], [0], [0], [1], [0, 0, 1, 1], [], []>} : vector<4x4xf32>, vector<4x16xf32>, vector<4x16xf32> -> vector<4x16xf32>
    %86 = vector.broadcast %2 : vector<4x1xf32> to vector<4x16xf32>
    %87 = arith.addf %85, %86 : vector<4x16xf32>
    %cst_57 = arith.constant 0.000000e+00 : f32
    %88 = vector.broadcast %cst_57 : f32 to vector<4x16xf32>
    %89 = arith.maximumf %87, %88 : vector<4x16xf32>
    %90 = arith.truncf %89 : vector<4x16xf32> to vector<4x16xbf16>
    %c0_58 = arith.constant 0 : index
    %c6_59 = arith.constant 6 : index
    %c0_60 = arith.constant 0 : index
    %91 = vector.load %arg6[%c0_58, %c6_59, %c0_60] : memref<4x8x16xbf16, #tpu.memory_space<vmem>>, vector<4x1x16xbf16>
    %92 = vector.shape_cast %91 : vector<4x1x16xbf16> to vector<4x16xbf16>
    %93 = vector.shape_cast %90 : vector<4x16xbf16> to vector<4x1x16xbf16>
    tpu.vector_store %arg6[%c0_58, %c6_59, %c0_60], %93 {strides = array<i32>} : memref<4x8x16xbf16, #tpu.memory_space<vmem>>, vector<4x1x16xbf16>,
    %c0_61 = arith.constant 0 : index
    %c7 = arith.constant 7 : index
    %c0_62 = arith.constant 0 : index
    %94 = vector.load %arg2[%c0_61, %c7, %c0_62] : memref<4x8x16xf32, #tpu.memory_space<vmem>>, vector<4x1x16xf32>
    %95 = vector.shape_cast %94 : vector<4x1x16xf32> to vector<4x16xf32>
    %96 = arith.truncf %95 : vector<4x16xf32> to vector<4x16xbf16>
    %cst_63 = arith.constant dense<0.000000e+00> : vector<4x16xf32>
    %97 = tpu.matmul %96, %0, %cst_63 {dimension_numbers = #tpu.dot_dimension_numbers<[1], [0], [0], [1], [0, 0, 1, 1], [], []>} : vector<4x16xbf16>, vector<16x16xbf16>, vector<4x16xf32> -> vector<4x16xf32>
    %cst_64 = arith.constant dense<0.000000e+00> : vector<4x16xf32>
    %98 = tpu.matmul %1, %97, %cst_64 {dimension_numbers = #tpu.dot_dimension_numbers<[1], [0], [0], [1], [0, 0, 1, 1], [], []>} : vector<4x4xf32>, vector<4x16xf32>, vector<4x16xf32> -> vector<4x16xf32>
    %99 = vector.broadcast %2 : vector<4x1xf32> to vector<4x16xf32>
    %100 = arith.addf %98, %99 : vector<4x16xf32>
    %cst_65 = arith.constant 0.000000e+00 : f32
    %101 = vector.broadcast %cst_65 : f32 to vector<4x16xf32>
    %102 = arith.maximumf %100, %101 : vector<4x16xf32>
    %103 = arith.truncf %102 : vector<4x16xf32> to vector<4x16xbf16>
    %c0_66 = arith.constant 0 : index
    %c7_67 = arith.constant 7 : index
    %c0_68 = arith.constant 0 : index
    %104 = vector.load %arg6[%c0_66, %c7_67, %c0_68] : memref<4x8x16xbf16, #tpu.memory_space<vmem>>, vector<4x1x16xbf16>
    %105 = vector.shape_cast %104 : vector<4x1x16xbf16> to vector<4x16xbf16>
    %106 = vector.shape_cast %103 : vector<4x16xbf16> to vector<4x1x16xbf16>
    tpu.vector_store %arg6[%c0_66, %c7_67, %c0_68], %106 {strides = array<i32>} : memref<4x8x16xbf16, #tpu.memory_space<vmem>>, vector<4x1x16xbf16>,
    return
  }
  func.func @transform_0(%arg0: i32, %arg1: i32) -> (i32, i32, i32) {
    %c0_i32 = arith.constant 0 : i32
    %c0_i32_0 = arith.constant 0 : i32
    return %arg0, %arg1, %c0_i32 : i32, i32, i32
  }
  func.func @transform_1(%arg0: i32, %arg1: i32) -> (i32, i32) {
    %c0_i32 = arith.constant 0 : i32
    %c0_i32_0 = arith.constant 0 : i32
    %c0_i32_1 = arith.constant 0 : i32
    return %c0_i32, %c0_i32_0 : i32, i32
  }
  func.func @transform_2(%arg0: i32, %arg1: i32) -> (i32, i32) {
    %c0_i32 = arith.constant 0 : i32
    %c0_i32_0 = arith.constant 0 : i32
    %c0_i32_1 = arith.constant 0 : i32
    return %c0_i32, %c0_i32_0 : i32, i32
  }
  func.func @transform_3(%arg0: i32, %arg1: i32) -> (i32, i32) {
    %c0_i32 = arith.constant 0 : i32
    %c0_i32_0 = arith.constant 0 : i32
    %c0_i32_1 = arith.constant 0 : i32
    return %c0_i32, %c0_i32_0 : i32, i32
  }
  func.func @transform_4(%arg0: i32, %arg1: i32) -> (i32, i32, i32) {
    %c0_i32 = arith.constant 0 : i32
    %c0_i32_0 = arith.constant 0 : i32
    return %arg0, %arg1, %c0_i32 : i32, i32, i32
  }
}

</mosaic_0001>

<bundles_post_ra>
// kernel: tpu_custom_call.1
= control target key start
LH: loop header
LB: loop body
LE: loop exit
PB: predicated region body
PF: predicated region fallthrough
CT: control target
= control target key end

     0   :  { %s2205_s0 = inlined_call_operand.hbm [shape: f32[8,16,16], index: 0, kind: input, shape index: {}]   ;;  %s2206_s1 = inlined_call_operand.hbm [shape: bf16[16,16], index: 1, kind: input, shape index: {}]   ;;  %s2207_s2 = inlined_call_operand.vmem [shape: f32[4,4], index: 2, kind: input, shape index: {}]   ;;  %s2208_s3 = inlined_call_operand.vmem [shape: f32[4,1], index: 3, kind: input, shape index: {}]   ;;  %s2209_s4 = inlined_call_operand.hbm [shape: bf16[8,16,16], index: 4, kind: output, shape index: {}]  }
   0x1   :  { %2217 = sst [smem:[#allocation16_spill]] %s2206_s1 }
   0x2   :  { %2218 = sst [smem:[#allocation17_spill]] %s2209_s4 }
   0x3   :  { %9 = vsyncpa [#allocation3], 0 }
   0x4   :  { %11 = vsyncpa [#allocation3 + $0x1], 0 }
   0x5   :  { %12 = vsyncpa [#allocation6], 0 }
   0x6   :  { %13 = vsyncpa [#allocation4], 0 }
   0x7   :  { %15 = vsyncpa [#allocation4 + $0x1], 0  ;;  %s1687_s15 = smov 0   ;;  %s1689_s16 = smov 0  }
   0x8   :  { %s1691_s17 = smov 0   ;;  %s1693_s18 = smov 0  }
   0x9   :  { %s1695_s19 = smov 0   ;;  %s1697_s20 = smov 0  }
   0xa   :  { %s1699_s21 = smov 0   ;;  %s1701_s22 = smov 0  }
   0xb LB: > { %2219 = sst [smem:[#allocation11_spill]] %s1621_s15  ;;  %s1321_s23 = sadd.s32 4294967295, %s1649_s22   ;;  %s1649_s22 = sphi %s1701_s22, %s21_s22   ;;  %s1645_s21 = sphi %s1699_s21, %s2261_s21   ;;  %s1641_s20 = sphi %s1697_s20, %s2260_s20   ;;  %s1637_s19 = sphi %s1695_s19, %s2259_s19   ;;  %s1633_s18 = sphi %s1693_s18, %s2258_s18   ;;  %s1629_s17 = sphi %s1691_s17, %s2257_s17   ;;  %s1625_s16 = sphi %s1689_s16, %s2256_s16   ;;  %s1621_s15 = sphi %s1687_s15, %s2255_s15  }
   0xc   : > { %s1322_s24 = sadd.s32 4294967294, %s1649_s22   ;;  %p55_p0 = scmp.ne.s32.totalorder %s1625_s16, %s1621_s15 }
   0xd   : > { %p1731_p1 = scmp.eq.s32.totalorder %s1321_s23, 0  ;;  %p1735_p2 = scmp.eq.s32.totalorder %s1321_s23, 3 }
   0xe   : > { %p150_p3 = scmp.eq.s32.totalorder %s1322_s24, 3  ;;  %p1323_p5 = scmp.ge.s32.totalorder %s1649_s22, 1 }
   0xf   : > { %p1741_p4 = por %p1731_p1, %p55_p0  ;;  %p157_p7 = scmp.lt.s32.totalorder %s1649_s22, 5 }
  0x10   : > { %p1746_p6 = por %p150_p3, %p55_p0  ;;  %s2225_s1 = sld [smem:[#allocation16_spill]] }
  0x11   : > { %p1754_p8 = pnand %p1323_p5, %p157_p7  ;;  %s1651_s7 = smov [#allocation5]  }
  0x12   : > { %s2223_s28 = scalar_select %p1746_p6, 1, 0 }
  0x13   : > { %p1395_p9 = pneg %p1754_p8  ;;  %s170_s8 = sshll.u32 %s1651_s7, 4  ;;  %s171_s8 = int_to_ptr.vmem [resolvable:$true] %s170_s8 }
  0x14   : > { %2224 = sst [smem:[#allocation12_spill]] %s2223_s28  ;;  %s1652_s9 = smov 64  }
  0x15   : > { %p1396_p10 = pnand %p1395_p9, %p1731_p1  ;;  %s1653_s10 = smov 4  }
  0x16   : > { %s168_s5 = sshll.u32 %s2225_s1, 4  ;;  %s30_s11 = sadd.s32 1, %s1641_s20  ;;  %s169_s5 = int_to_ptr.hbm [resolvable:$true] %s168_s5 }
  0x17   : > { %1398 = dma.hbm_to_vmem [thread:$0]  (!%p1396_p10), %s169_s5, 128, %s171_s8, [#allocation6], %s1652_s9, %s1652_s9, %s1653_s10  }
  0x18   : > { %p31_p11 = scmp.ge.s32.totalorder %s30_s11, 2  ;;  %s33_s12 = sadd.s32 1, %s1645_s21 }
  0x19   : > { %s42_s13 = sadd.s32 1, %s1629_s17  ;;  %p49_p12 = scmp.ne.s32.totalorder %s1629_s17, %s1625_s16 }
  0x1a   : > { %s2263_s11 = smov (%p31_p11, %s30_s11), 0  ;;  %s2265_s12 = smov (!%p31_p11, %s33_s12), %s1645_s21 }
  0x1b   : > { %2227 = sst [smem:[#allocation13_spill]] %s2263_s11  ;;  %s38_s14 = ssub.s32 %s1641_s20, %s2263_s11 }
  0x1c   : > { %p50_p13 = scmp.eq.s32.totalorder %s1649_s22, 0  ;;  %p35_p0 = scmp.ge.s32.totalorder %s2265_s12, 2 }
  0x1d   : > { %p1775_p3 = por %p1735_p2, %p49_p12  ;;  %p1408_p7 = scmp.lt.s32.totalorder %s1649_s22, 4 }
  0x1e   : > { %p1779_p5 = por %p50_p13, %p49_p12  ;;  %s2267_s12 = smov (%p35_p0, %s2265_s12), 0 }
  0x1f   : > { %s2228_s23 = scalar_select %p1775_p3, 1, 0 }
  0x20   : > { %2231 = sst [smem:[#allocation15_spill]] %s2267_s12  ;;  %s190_s29 = sand.u32 1, %s1629_s17  }
  0x21   : > { %2229 = sst [smem:[#allocation14_spill]] %s2228_s23  ;;  %s1384_s30 = sshll.u32 %s1645_s21, 3 }
  0x22   : > { %s37_s5 = ssub.s32 %s1645_s21, %s2267_s12  ;;  %s1326_s8 = sshll.u32 %s190_s29, 5 }
  0x23   : > { %s39_s7 = sor.u32 %s38_s14, %s37_s5  ;;  %s199_s26 = sadd.s32 %s1641_s20, %s1384_s30 }
  0x24   : > { %p40_p9 = scmp.eq.s32.totalorder %s39_s7, 0  ;;  %s194_s9 = scalar_lea.vmem [#allocation2], %s1326_s8 }
  0x25   : > { %s204_s10 = sshll.u32 %s194_s9, 4  ;;  %s1329_s11 = sshll.u32 %s199_s26, 3  ;;  %s205_s10 = int_to_ptr.vmem [resolvable:$true] %s204_s10 }
  0x26   : > { %s1792_s1 = scalar_select %p40_p9, %s1629_s17, %s42_s13  }
  0x27   : > { %s201_s23 = scalar_lea.hbm %s2205_s0, %s1329_s11  ;;  %p1400_p2 = pnand %p1408_p7, %p1779_p5 }
  0x28   : > { %s202_s4 = sshll.u32 %s201_s23, 4  ;;  %s191_s12 = scalar_lea.sflag [#allocation3], %s190_s29  ;;  %s203_s4 = int_to_ptr.hbm [resolvable:$true] %s202_s4 }
  0x29   : > { %s1654_s14 = smov 256   ;;  %s1655_s5 = smov 128  }
  0x2a   : > { %s1656_s7 = smov 8   ;;  %216 = sbr.rel (%p1754_p8) target bundleno = 898 (0x382), region = 36 }
  0x2b   : > { %1402 = dma.hbm_to_vmem [thread:$0]  (!%p1400_p2), %s203_s4, 512, %s205_s10, %s191_s12, %s1654_s14, %s1655_s5, %s1656_s7  }
  0x2c   : > { %s1804_s13 = sand.u32 (!%p1754_p8), 1, %s1625_s16  }
  0x2d   : > { %s1331_s15 = sshll.u32 (!%p1754_p8), %s1804_s13, 5  ;;  %s219_s28 = scalar_lea.sflag (!%p1754_p8), [#allocation3], %s1804_s13 }
  0x2e   : > { %s1808_s11 = scalar_lea.vmem (!%p1754_p8), [#allocation2], %s1331_s15 }
  0x2f   : > { %1608 = dma.done.wait (%p1741_p4), %s219_s28, 512  }
  0x30   : > { %1610 = vsyncadd (%p1741_p4), %s219_s28, 4294966784 }
  0x31   : > { %1612 = dma.done.wait (%p1731_p1), [#allocation6], 128  }
  0x32   : > { %1614 = vsyncadd (%p1731_p1), [#allocation6], 4294967168  ;;  %v1818_v0 = vld [vmem:[#allocation5] sm:$0xff]  ;;  %v261_v2 = vld [vmem:[%s1808_s11 + $0x8] sm:$0x1]  ;;  %vm277_vm0 = vcmask 1041409  }
  0x33   : > { %v260_v1 = vld [vmem:[%s1808_s11] sm:$0x1]  ;;  %v262_v3 = vld [vmem:[%s1808_s11 + $0x10] sm:$0x1]  ;;  %v263_v4 = vld [vmem:[%s1808_s11 + $0x18] sm:$0x1]  ;;  %v265_v6 = vpack.c.bf16 %v261_v2, %v261_v2  ;;  %303 = vmatpush.bf16.msra.mxu0 %v1818_v0  ;;  %545 = vmatpush.bf16.msra.mxu1 %v1818_v0 }
  0x34   : > { %v264_v5 = vpack.c.bf16 %v260_v1, %v260_v1  ;;  %v266_v7 = vpack.c.bf16 %v262_v3, %v262_v3  ;;  %v267_v8 = vpack.c.bf16 %v263_v4, %v263_v4  ;;  %vm280_vm1 = vcmask 1042434   ;;  %v513_v20 = vld [vmem:[%s1808_s11 + $0xa] sm:$0x1]  ;;  %v514_v21 = vld [vmem:[%s1808_s11 + $0x12] sm:$0x1]  ;;  %s1333_s12 = sshll.u32 %s1804_s13, 4 }
  0x35   : > { %v273_v10 = vunpack.c.l.b16 %v265_v6  ;;  %vm283_vm2 = vcmask 1043459   ;;  %vm292_vm3 = vcmask 130048   ;;  %v517_v22 = vpack.c.bf16 %v513_v20, %v513_v20  ;;  %v512_v23 = vld [vmem:[%s1808_s11 + $0x2] sm:$0x1]  ;;  %v515_v24 = vld [vmem:[%s1808_s11 + $0x1a] sm:$0x1] }
  0x36   : > { %v272_v9 = vunpack.c.l.b16 %v264_v5  ;;  %v274_v11 = vunpack.c.l.b16 %v266_v7  ;;  %v275_v12 = vunpack.c.l.b16 %v267_v8  ;;  %v518_v25 = vpack.c.bf16 %v514_v21, %v514_v21  ;;  %v259_v34 = vld [vmem:[%s2208_s3] sm:$0xf]  ;;  %v398_v40 = vld [vmem:[%s1808_s11 + $0x9] sm:$0x1]  ;;  %v399_v42 = vld [vmem:[%s1808_s11 + $0x11] sm:$0x1] }
  0x37   : > { %v276_v13 = vrot.slane %v273_v10, 7  ;;  %v516_v26 = vpack.c.bf16 %v512_v23, %v512_v23  ;;  %v519_v27 = vpack.c.bf16 %v515_v24, %v515_v24  ;;  %v525_v28 = vunpack.c.l.b16 %v517_v22  ;;  %v397_v44 = vld [vmem:[%s1808_s11 + $0x1] sm:$0x1]  ;;  %v400_v45 = vld [vmem:[%s1808_s11 + $0x19] sm:$0x1]  ;;  %s1879_s23 = scalar_lea.vmem [#allocation7], %s1333_s12 }
  0x38   : > { %v279_v14 = vrot.slane %v274_v11, 6  ;;  %v282_v15 = vrot.slane %v275_v12, 5  ;;  %v526_v29 = vunpack.c.l.b16 %v518_v25  ;;  %v1657_v37 = vmov 0   ;;  %v1849_v56 = vld [vmem:[%s2207_s2] sm:$0xf]  ;;  %s1386_s24 = sshll.u32 %s1637_s19, 3 }
  0x39   : > { %v278_v16 = vsel %vm277_vm0, %v276_v13, %v272_v9  ;;  %v524_v30 = vunpack.c.l.b16 %v516_v26  ;;  %v527_v31 = vunpack.c.l.b16 %v519_v27  ;;  %v528_v32 = vrot.slane %v525_v28, 7  ;;  %1486 = vset.pattern.permute.xlu0 %v1657_v37  ;;  %v629_v3 = vld [vmem:[%s1808_s11 + $0xb] sm:$0x1]  ;;  %v630_v5 = vld [vmem:[%s1808_s11 + $0x13] sm:$0x1]  ;;  %s1217_s29 = sadd.s32 %s1633_s18, %s1386_s24  ;;  %s2246_s19 = sld [smem:[#allocation17_spill]] }
  0x3a   : > { %v281_v17 = vsel %vm280_vm1, %v279_v14, %v278_v16  ;;  %v530_v33 = vrot.slane %v526_v29, 6  ;;  %311 = vperm.xlu0 %1486, %v259_v34   ;;  %v402_v43 = vpack.c.bf16 %v398_v40, %v398_v40  ;;  %v403_v46 = vpack.c.bf16 %v399_v42, %v399_v42  ;;  %v628_v8 = vld [vmem:[%s1808_s11 + $0x3] sm:$0x1]  ;;  %v631_v13 = vld [vmem:[%s1808_s11 + $0x1b] sm:$0x1]  ;;  %s1381_s30 = sshll.u32 %s1217_s29, 2 }
  0x3b   : > { %v284_v18 = vsel %vm283_vm2, %v282_v15, %v281_v17  ;;  %v529_v35 = vsel %vm277_vm0, %v528_v32, %v524_v30  ;;  %v532_v36 = vrot.slane %v527_v31, 5  ;;  %v401_v47 = vpack.c.bf16 %v397_v44, %v397_v44  ;;  %v385_v30 = vld [vmem:[%s1879_s23] sm:$0x1]  ;;  %v388_v37 = vld [vmem:[%s1879_s23 + $0x4] sm:$0x1]  ;;  %s1220_s10 = sshll.u32 %s1879_s23, 4  ;;  %s2152_s10 = int_to_ptr.vmem [resolvable:$true] %s1220_s10 }
  0x3c   : > { %v285_v19 = vpack.c.b16 %v284_v18, %v284_v18  ;;  %v531_v38 = vsel %vm280_vm1, %v530_v33, %v529_v35  ;;  %v410_v48 = vunpack.c.l.b16 %v402_v43  ;;  %v404_v49 = vpack.c.bf16 %v400_v45, %v400_v45  ;;  %v394_v44 = vld [vmem:[%s1879_s23 + $0xc] sm:$0x1]  ;;  %s1206_s7 = scalar_lea.sflag [#allocation4], %s1804_s13 }
  0x3d   : > { %v533_v39 = vsel %vm283_vm2, %v532_v36, %v531_v38  ;;  %v411_v50 = vunpack.c.l.b16 %v403_v46  ;;  %v409_v51 = vunpack.c.l.b16 %v401_v47  ;;  %vm318_vm4 = vcmask 1043456   ;;  %v391_v38 = vld [vmem:[%s1879_s23 + $0x8] sm:$0x1] }
  0x3e   : > { %1338 = vmatmul.msk.bf16.vlgmr.msra.gmra.mxu0 %vm292_vm3, %v285_v19  ;;  %v534_v41 = vpack.c.b16 %v533_v39, %v533_v39  ;;  %v413_v52 = vrot.slane %v410_v48, 7  ;;  %v412_v53 = vunpack.c.l.b16 %v404_v49  ;;  %vm314_vm5 = vcmask 31744  }
  0x3f   : > { %v415_v54 = vrot.slane %v411_v50, 6  ;;  %v633_v7 = vpack.c.bf16 %v629_v3, %v629_v3  ;;  %v634_v10 = vpack.c.bf16 %v630_v5, %v630_v5  ;;  %v1658_v11 = vmov 286326784   ;;  %s2247_s9 = smov %s2246_s19  ;;  %s1219_s18 = scalar_lea.hbm %s2246_s19, %s1381_s30 }
  0x40   : > { %1348 = vmatmul.msk.bf16.vlgmr.msra.gmra.mxu1 %vm292_vm3, %v534_v41  ;;  %v414_v55 = vsel %vm277_vm0, %v413_v52, %v409_v51  ;;  %v417_v57 = vrot.slane %v412_v53, 5  ;;  %v363_v12 = vunpack.c.l.s4 %v1658_v11  ;;  %v632_v15 = vpack.c.bf16 %v628_v8, %v628_v8  ;;  %s1222_s14 = sshll.u32 %s1219_s18, 4  ;;  %s1567_s25 = scalar_lea.hbm %s2247_s9, 64  ;;  %s1223_s14 = int_to_ptr.hbm [resolvable:$true] %s1222_s14 }
  0x41   : > { %v416_v59 = vsel %vm280_vm1, %v415_v54, %v414_v55  ;;  %v641_v16 = vunpack.c.l.b16 %v633_v7  ;;  %vm346_vm6 = vcmask 1040384   ;;  %v635_v18 = vpack.c.bf16 %v631_v13, %v631_v13  ;;  %v744_v54 = vld [vmem:[%s1808_s11 + $0xc] sm:$0x1]  ;;  %v745_v55 = vld [vmem:[%s1808_s11 + $0x14] sm:$0x1]  ;;  %s1561_s15 = sshra.s32 %s1223_s14, 4  ;;  %s1562_s15 = int_to_ptr.hbm [resolvable:$true] %s1561_s15 }
  0x42   : > { %v418_v60 = vsel %vm283_vm2, %v417_v57, %v416_v59  ;;  %v642_v19 = vunpack.c.l.b16 %v634_v10  ;;  %v1867_v20 = vunpack.c.0.s8 %v363_v12  ;;  %vm382_vm7 = vcmask 122880   ;;  %v746_v59 = vld [vmem:[%s1808_s11 + $0x1c] sm:$0x1]  ;;  %v860_v12 = vld [vmem:[%s1808_s11 + $0xd] sm:$0x1]  ;;  %s1563_s28 = scalar_lea.hbm %s1562_s15, 16  ;;  %p1568_p10 = scmp.lt.s32.totalorder %s1562_s15, %s2247_s9 }
  0x43   : > { %v419_v61 = vpack.c.b16 %v418_v60, %v418_v60  ;;  %vm383_vm8 = vsmask.f32 256  ;;  %v640_v24 = vunpack.c.l.b16 %v632_v15  ;;  %v644_v25 = vrot.slane %v641_v16, 7  ;;  %v974_v13 = vld [vmem:[%s1808_s11 + $0x6] sm:$0x1]  ;;  %p1564_p1 = scmp.ne.s32.totalorder %s1562_s15, %s1563_s28  ;;  %p1569_p11 = scmp.lt.s32.totalorder %s1567_s25, %s1563_s28 }
  0x44   : > { %vm1875_vm9 = vmand %vm382_vm7, %vm383_vm8  ;;  %v643_v31 = vunpack.c.l.b16 %v635_v18  ;;  %v646_v32 = vrot.slane %v642_v19, 6  ;;  %v748_v57 = vpack.c.bf16 %v744_v54, %v744_v54  ;;  %v749_v60 = vpack.c.bf16 %v745_v55, %v745_v55  ;;  %v976_v15 = vld [vmem:[%s1808_s11 + $0x16] sm:$0x1]  ;;  %v977_v16 = vld [vmem:[%s1808_s11 + $0x1e] sm:$0x1] }
  0x45   : > { %v645_v39 = vsel %vm277_vm0, %v644_v25, %v640_v24  ;;  %v980_v19 = vpack.c.bf16 %v976_v15, %v976_v15  ;;  %vm498_vm10 = vsmask.f32 7938  ;;  %vm613_vm12 = vcmask 123905   ;;  %p1565_p4 = pnand %p1564_p1, %p1775_p3  ;;  %p1570_p12 = por %p1569_p11, %p1568_p10 }
  0x46   : > { %v648_v45 = vrot.slane %v643_v31, 5  ;;  %v647_v50 = vsel %vm280_vm1, %v646_v32, %v645_v39  ;;  %vm1936_vm11 = vmand %vm382_vm7, %vm498_vm10  ;;  %vm614_vm13 = vsmask.f32 1280  ;;  %vm729_vm15 = vsmask.f32 7942 }
  0x47   : > { %vm1969_vm14 = vmand %vm613_vm12, %vm614_vm13  ;;  %vm845_vm7 = vsmask.f32 2304  ;;  %vm1075_vm8 = vcmask 125955   ;;  %p1566_p8 = pneg %p1565_p4 }
  0x48   : > { %v649_v52 = vsel %vm283_vm2, %v648_v45, %v647_v50 }
  0x49   : > { %v650_v53 = vpack.c.b16 %v649_v52, %v649_v52  ;;  %p1571_p13 = pnand %p1570_p12, %p1566_p8 }
  0xac   : > { %v1859_v2 = vpop.permute.xlu0 %311 }
  0xbb   : > { %v305_v58 = vpop.f32.mrf.mxu0 }
  0xbc   : > { %1339 = vmatpush.msk.msra.mxu2 %vm318_vm4, %v305_v58  ;;  %v743_v58 = vld [vmem:[%s1808_s11 + $0x4] sm:$0x1] }
  0xbd   : > { %1340 = vmatmul.msk.f32.vlgmr.msra.gmra.mxu2 %vm314_vm5, %v1849_v56  ;;  %v547_v63 = vpop.f32.mrf.mxu1 }
  0xbe   : > { %430 = vmatpush.bf16.msrb.mxu2 %v1818_v0 }
  0xc2   : > { %776 = vmatpush.bf16.msra.mxu2 %v1818_v0 }
  0xc3   : > { %v307_v62 = vpop.f32.mrf.mxu0 }
  0xc4   : > { %v750_v62 = vpack.c.bf16 %v746_v59, %v746_v59 }
  0xc5   : > { %1343 = vmatmul.msk.bf16.vlgmr.msrb.gmra.mxu2 %vm292_vm3, %v419_v61  ;;  %v549_v1 = vpop.f32.mrf.mxu1  ;;  %v747_v61 = vpack.c.bf16 %v743_v58, %v743_v58 }
  0xc6   : > { %v757_v1 = vunpack.c.l.b16 %v749_v60 }
  0xc7   : > { %v755_v3 = vunpack.c.l.b16 %v747_v61 }
 0x140   : > { %v339_v4 = vpop.f32.mrf.mxu2 }
 0x141   : > { %v340_v6 = vadd.f32 %v339_v4, %v1859_v2  ;;  %v758_v4 = vunpack.c.l.b16 %v750_v62 }
 0x143   : > { %v342_v9 = vmax.f32 %v340_v6, 0.0  ;;  %v761_v6 = vrot.slane %v757_v1, 6  ;;  %v763_v8 = vrot.slane %v758_v4, 5 }
 0x145   : > { %v343_v14 = vpack.c.bf16 %v342_v9, %v342_v9 }
 0x147   : > { %v345_v17 = vrot.slane %v343_v14, 3 }
 0x148   : > { %v432_v21 = vpop.f32.mrf.mxu2 }
 0x149   : > { %v349_v22 = vsel %vm346_vm6, %v343_v14, %v345_v17  ;;  %v351_v23 = vsel %vm277_vm0, %v343_v14, %v345_v17  ;;  %1344 = vmatpush.msk.msra.mxu3 %vm318_vm4, %v432_v21  ;;  %v975_v14 = vld [vmem:[%s1808_s11 + $0xe] sm:$0x1]  ;;  %v978_v17 = vpack.c.bf16 %v974_v13, %v974_v13  ;;  %v981_v21 = vpack.c.bf16 %v977_v16, %v977_v16 }
 0x14a   : > { %v353_v26 = vrot.slane %v351_v23, 1  ;;  %v355_v27 = vunpack.i.h.s16 %v349_v22  ;;  %v1341_v28 = vpack.i.b16 %v349_v22, %v349_v22  ;;  %1345 = vmatmul.msk.f32.vlgmr.msra.gmra.mxu3 %vm314_vm5, %v1849_v56  ;;  %v979_v18 = vpack.c.bf16 %v975_v14, %v975_v14  ;;  %v861_v22 = vld [vmem:[%s1808_s11 + $0x15] sm:$0x1] }
 0x14b   : > { %1349 = vmatpush.msk.msrb.mxu3 %vm318_vm4, %v547_v63  ;;  %v756_v63 = vunpack.c.l.b16 %v748_v57  ;;  %v864_v23 = vpack.c.bf16 %v860_v12, %v860_v12  ;;  %v986_v24 = vunpack.c.l.b16 %v978_v17 }
 0x14c   : > { %v357_v33 = vunpack.i.h.s16 %v353_v26  ;;  %v359_v34 = vpack.i.b16 %v355_v27, %v355_v27  ;;  %v1342_v35 = vpack.i.b16 %v353_v26, %v353_v26  ;;  %v365_v36 = vperm.slane %v1341_v28, %v1867_v20  ;;  %v859_v27 = vld [vmem:[%s1808_s11 + $0x5] sm:$0x1] }
 0x14d   : > { %661 = vmatpush.bf16.msra.mxu3 %v1818_v0  ;;  %v759_v5 = vrot.slane %v756_v63, 7  ;;  %v987_v25 = vunpack.c.l.b16 %v979_v18  ;;  %v988_v26 = vunpack.c.l.b16 %v980_v19  ;;  %v989_v28 = vunpack.c.l.b16 %v981_v21 }
 0x14e   : > { %v361_v40 = vpack.i.b16 %v357_v33, %v357_v33  ;;  %v369_v41 = vperm.slane %v359_v34, %v1867_v20  ;;  %v373_v42 = vperm.slane %v1342_v35, %v1867_v20  ;;  %v386_v43 = vsel %vm1875_vm9, %v365_v36, %v385_v30  ;;  %v862_v33 = vld [vmem:[%s1808_s11 + $0x1d] sm:$0x1] }
 0x14f   : > { %387 = vst [vmem:[%s1879_s23] sm:$0x1] %v386_v43  ;;  %v760_v7 = vsel %vm277_vm0, %v759_v5, %v755_v3  ;;  %v990_v30 = vrot.slane %v987_v25, 7  ;;  %v992_v31 = vrot.slane %v988_v26, 6  ;;  %v865_v34 = vpack.c.bf16 %v861_v22, %v861_v22 }
 0x150   : > { %v377_v46 = vperm.slane %v361_v40, %v1867_v20  ;;  %v389_v47 = vsel %vm1875_vm9, %v369_v41, %v388_v37  ;;  %v392_v48 = vsel %vm1875_vm9, %v373_v42, %v391_v38  ;;  %v434_v49 = vpop.f32.mrf.mxu2  ;;  %v762_v9 = vsel %vm280_vm1, %v761_v6, %v760_v7 }
 0x151   : > { %390 = vst [vmem:[%s1879_s23 + $0x4] sm:$0x1] %v389_v47  ;;  %v764_v10 = vsel %vm283_vm2, %v763_v8, %v762_v9  ;;  %v994_v35 = vrot.slane %v989_v28, 5  ;;  %v863_v36 = vpack.c.bf16 %v859_v27, %v859_v27  ;;  %v872_v37 = vunpack.c.l.b16 %v864_v23 }
 0x152   : > { %393 = vst [vmem:[%s1879_s23 + $0x8] sm:$0x1] %v392_v48  ;;  %v395_v51 = vsel %vm1875_vm9, %v377_v46, %v394_v44  ;;  %1350 = vmatmul.msk.f32.vlgmr.msrb.gmra.mxu3 %vm314_vm5, %v1849_v56  ;;  %v765_v11 = vpack.c.b16 %v764_v10, %v764_v10  ;;  %v991_v38 = vsel %vm277_vm0, %v990_v30, %v986_v24  ;;  %v873_v44 = vunpack.c.l.b16 %v865_v34  ;;  %v619_v34 = vld [vmem:[%s1879_s23 + $0x4] sm:$0x2] }
 0x153   : > { %396 = vst [vmem:[%s1879_s23 + $0xc] sm:$0x1] %v395_v51  ;;  %1007 = vmatpush.bf16.msrb.mxu3 %v1818_v0  ;;  %v993_v40 = vsel %vm280_vm1, %v992_v31, %v991_v38  ;;  %v866_v41 = vpack.c.bf16 %v862_v33, %v862_v33  ;;  %v871_v46 = vunpack.c.l.b16 %v863_v36  ;;  %v875_v47 = vrot.slane %v872_v37, 7 }
 0x154   : > { %1358 = vmatmul.msk.bf16.vlgmr.msra.gmra.mxu2 %vm292_vm3, %v765_v11  ;;  %v995_v42 = vsel %vm283_vm2, %v994_v35, %v993_v40  ;;  %v877_v54 = vrot.slane %v873_v44, 6  ;;  %v622_v35 = vld [vmem:[%s1879_s23 + $0x8] sm:$0x2]  ;;  %vm1076_vm9 = vsmask.f32 3328 }
 0x155   : > { %v996_v45 = vpack.c.b16 %v995_v42, %v995_v42  ;;  %v874_v50 = vunpack.c.l.b16 %v866_v41  ;;  %v876_v59 = vsel %vm277_vm0, %v875_v47, %v871_v46  ;;  %v625_v41 = vld [vmem:[%s1879_s23 + $0xc] sm:$0x2]  ;;  %vm2074_vm10 = vmand %vm1075_vm8, %vm1076_vm9 }
 0x156   : > { %v500_v4 = vld [vmem:[%s1879_s23] sm:$0x1]  ;;  %v878_v6 = vsel %vm280_vm1, %v877_v54, %v876_v59 }
 0x157   : > { %v879_v7 = vrot.slane %v874_v50, 5  ;;  %v1092_v50 = vld [vmem:[%s1808_s11 + $0x17] sm:$0x1] }
 0x158   : > { %v503_v12 = vld [vmem:[%s1879_s23 + $0x4] sm:$0x1]  ;;  %v1096_v54 = vpack.c.bf16 %v1092_v50, %v1092_v50 }
 0x159   : > { %v506_v13 = vld [vmem:[%s1879_s23 + $0x8] sm:$0x1]  ;;  %v880_v23 = vsel %vm283_vm2, %v879_v7, %v878_v6 }
 0x15a   : > { %1353 = vmatmul.msk.bf16.vlgmr.msra.gmra.mxu3 %vm292_vm3, %v650_v53  ;;  %v509_v19 = vld [vmem:[%s1879_s23 + $0xc] sm:$0x1]  ;;  %v881_v36 = vpack.c.b16 %v880_v23, %v880_v23  ;;  %v1104_v60 = vunpack.c.l.b16 %v1096_v54  ;;  %v850_v54 = vld [vmem:[%s1879_s23 + $0x4] sm:$0x4] }
 0x16a   : > { %1368 = vmatmul.msk.bf16.vlgmr.msrb.gmra.mxu3 %vm292_vm3, %v996_v45 }
 0x1cd   : > { %v456_v29 = vpop.f32.mrf.mxu3 }
 0x1ce   : > { %v457_v32 = vadd.f32 %v456_v29, %v1859_v2  ;;  %v616_v29 = vld [vmem:[%s1879_s23] sm:$0x2] }
 0x1d0   : > { %v459_v39 = vmax.f32 %v457_v32, 0.0 }
 0x1d2   : > { %v460_v43 = vpack.c.bf16 %v459_v39, %v459_v39 }
 0x1d4   : > { %v462_v48 = vrot.slane %v460_v43, 3 }
 0x1d5   : > { %v571_v49 = vpop.f32.mrf.mxu3 }
 0x1d6   : > { %v465_v51 = vsel %vm346_vm6, %v460_v43, %v462_v48  ;;  %v467_v52 = vsel %vm277_vm0, %v460_v43, %v462_v48  ;;  %v572_v53 = vadd.f32 %v571_v49, %v1859_v2  ;;  %v1091_v49 = vld [vmem:[%s1808_s11 + $0xf] sm:$0x1] }
 0x1d7   : > { %v469_v55 = vrot.slane %v467_v52, 1  ;;  %v471_v57 = vunpack.i.h.s16 %v465_v51  ;;  %v1346_v58 = vpack.i.b16 %v465_v51, %v465_v51  ;;  %v778_v47 = vpop.f32.mrf.mxu2  ;;  %v1095_v51 = vpack.c.bf16 %v1091_v49, %v1091_v49  ;;  %v1090_v52 = vld [vmem:[%s1808_s11 + $0x7] sm:$0x1]  ;;  %v847_v49 = vld [vmem:[%s1879_s23] sm:$0x4] }
 0x1d8   : > { %v574_v61 = vmax.f32 %v572_v53, 0.0  ;;  %1359 = vmatpush.msk.msrb.mxu1 %vm318_vm4, %v778_v47  ;;  %v1093_v53 = vld [vmem:[%s1808_s11 + $0x1f] sm:$0x1] }
 0x1d9   : > { %v473_v62 = vunpack.i.h.s16 %v469_v55  ;;  %v475_v63 = vpack.i.b16 %v471_v57, %v471_v57  ;;  %v1347_v1 = vpack.i.b16 %v469_v55, %v469_v55  ;;  %v481_v3 = vperm.slane %v1346_v58, %v1867_v20  ;;  %1360 = vmatmul.msk.f32.vlgmr.msrb.gmra.mxu1 %vm314_vm5, %v1849_v56 }
 0x1da   : > { %v575_v5 = vpack.c.bf16 %v574_v61, %v574_v61  ;;  %v1094_v57 = vpack.c.bf16 %v1090_v52, %v1090_v52  ;;  %v1103_v58 = vunpack.c.l.b16 %v1095_v51  ;;  %v1097_v59 = vpack.c.bf16 %v1093_v53, %v1093_v53 }
 0x1db   : > { %v477_v8 = vpack.i.b16 %v473_v62, %v473_v62  ;;  %v485_v9 = vperm.slane %v475_v63, %v1867_v20  ;;  %v489_v10 = vperm.slane %v1347_v1, %v1867_v20  ;;  %v501_v11 = vsel %vm1936_vm11, %v481_v3, %v500_v4 }
 0x1dc   : > { %502 = vst [vmem:[%s1879_s23] sm:$0x1] %v501_v11  ;;  %v577_v14 = vrot.slane %v575_v5, 3  ;;  %v1102_v62 = vunpack.c.l.b16 %v1094_v57  ;;  %v1106_v63 = vrot.slane %v1103_v58, 7  ;;  %v1105_v3 = vunpack.c.l.b16 %v1097_v59 }
 0x1dd   : > { %v493_v15 = vperm.slane %v477_v8, %v1867_v20  ;;  %v504_v16 = vsel %vm1936_vm11, %v485_v9, %v503_v12  ;;  %v507_v17 = vsel %vm1936_vm11, %v489_v10, %v506_v13  ;;  %v663_v18 = vpop.f32.mrf.mxu3 }
 0x1de   : > { %505 = vst [vmem:[%s1879_s23 + $0x4] sm:$0x1] %v504_v16  ;;  %v580_v21 = vsel %vm346_vm6, %v575_v5, %v577_v14  ;;  %v582_v22 = vsel %vm277_vm0, %v575_v5, %v577_v14  ;;  %1354 = vmatpush.msk.msrb.mxu0 %vm318_vm4, %v663_v18  ;;  %v1108_v5 = vrot.slane %v1104_v60, 6  ;;  %v1107_v7 = vsel %vm277_vm0, %v1106_v63, %v1102_v62 }
 0x1df   : > { %508 = vst [vmem:[%s1879_s23 + $0x8] sm:$0x1] %v507_v17  ;;  %v510_v24 = vsel %vm1936_vm11, %v493_v15, %v509_v19  ;;  %v584_v25 = vrot.slane %v582_v22, 1  ;;  %v586_v26 = vunpack.i.h.s16 %v580_v21  ;;  %v1351_v27 = vpack.i.b16 %v580_v21, %v580_v21  ;;  %1355 = vmatmul.msk.f32.vlgmr.msrb.gmra.mxu0 %vm314_vm5, %v1849_v56  ;;  %v780_v48 = vpop.f32.mrf.mxu2 }
 0x1e0   : > { %511 = vst [vmem:[%s1879_s23 + $0xc] sm:$0x1] %v510_v24  ;;  %892 = vmatpush.bf16.msra.mxu0 %v1818_v0  ;;  %v1110_v9 = vrot.slane %v1105_v3, 5  ;;  %v1109_v11 = vsel %vm280_vm1, %v1108_v5, %v1107_v7  ;;  %vm2015_vm1 = vmand %vm613_vm12, %vm729_vm15  ;;  %vm960_vm11 = vsmask.f32 7946 }
 0x1e1   : > { %v588_v30 = vunpack.i.h.s16 %v584_v25  ;;  %v590_v31 = vpack.i.b16 %v586_v26, %v586_v26  ;;  %v1352_v32 = vpack.i.b16 %v584_v25, %v584_v25  ;;  %v596_v33 = vperm.slane %v1351_v27, %v1867_v20 }
 0x1e2   : > { %v1111_v18 = vsel %vm283_vm2, %v1110_v9, %v1109_v11  ;;  %vm844_vm2 = vcmask 124930  }
 0x1e3   : > { %v592_v37 = vpack.i.b16 %v588_v30, %v588_v30  ;;  %v600_v38 = vperm.slane %v590_v31, %v1867_v20  ;;  %v604_v39 = vperm.slane %v1352_v32, %v1867_v20  ;;  %v617_v40 = vsel %vm1969_vm14, %v596_v33, %v616_v29  ;;  %vm2098_vm12 = vmand %vm844_vm2, %vm960_vm11 }
 0x1e4   : > { %618 = vst [vmem:[%s1879_s23] sm:$0x2] %v617_v40  ;;  %v1112_v26 = vpack.c.b16 %v1111_v18, %v1111_v18 }
 0x1e5   : > { %v608_v42 = vperm.slane %v592_v37, %v1867_v20  ;;  %v620_v43 = vsel %vm1969_vm14, %v600_v38, %v619_v34  ;;  %v623_v44 = vsel %vm1969_vm14, %v604_v39, %v622_v35  ;;  %v665_v45 = vpop.f32.mrf.mxu3 }
 0x1e6   : > { %621 = vst [vmem:[%s1879_s23 + $0x4] sm:$0x2] %v620_v43 }
 0x1e7   : > { %624 = vst [vmem:[%s1879_s23 + $0x8] sm:$0x2] %v623_v44  ;;  %v626_v46 = vsel %vm1969_vm14, %v608_v42, %v625_v41  ;;  %1363 = vmatmul.msk.bf16.vlgmr.msra.gmra.mxu0 %vm292_vm3, %v881_v36 }
 0x1e8   : > { %627 = vst [vmem:[%s1879_s23 + $0xc] sm:$0x2] %v626_v46 }
 0x1eb   : > { %v731_v25 = vld [vmem:[%s1879_s23] sm:$0x2] }
 0x1ed   : > { %v1009_v55 = vpop.f32.mrf.mxu3 }
 0x1ee   : > { %1369 = vmatpush.msk.msrb.mxu2 %vm318_vm4, %v1009_v55  ;;  %v737_v31 = vld [vmem:[%s1879_s23 + $0x8] sm:$0x2]  ;;  %v853_v55 = vld [vmem:[%s1879_s23 + $0x8] sm:$0x4] }
 0x1ef   : > { %1370 = vmatmul.msk.f32.vlgmr.msrb.gmra.mxu2 %vm314_vm5, %v1849_v56  ;;  %v740_v36 = vld [vmem:[%s1879_s23 + $0xc] sm:$0x2] }
 0x1f5   : > { %v1011_v6 = vpop.f32.mrf.mxu3 }
 0x256   : > { %v802_v38 = vpop.f32.mrf.mxu1 }
 0x257   : > { %v803_v39 = vadd.f32 %v802_v38, %v1859_v2 }
 0x259   : > { %v805_v40 = vmax.f32 %v803_v39, 0.0 }
 0x25b   : > { %v806_v41 = vpack.c.bf16 %v805_v40, %v805_v40 }
 0x25c   : > { %v687_v61 = vpop.f32.mrf.mxu0 }
 0x25d   : > { %v688_v1 = vadd.f32 %v687_v61, %v1859_v2  ;;  %v808_v42 = vrot.slane %v806_v41, 3  ;;  %v856_v61 = vld [vmem:[%s1879_s23 + $0xc] sm:$0x4] }
 0x25f   : > { %v690_v4 = vmax.f32 %v688_v1, 0.0  ;;  %v811_v43 = vsel %vm346_vm6, %v806_v41, %v808_v42  ;;  %v813_v44 = vsel %vm277_vm0, %v806_v41, %v808_v42 }
 0x260   : > { %v815_v45 = vrot.slane %v813_v44, 1  ;;  %v817_v46 = vunpack.i.h.s16 %v811_v43  ;;  %v1361_v47 = vpack.i.b16 %v811_v43, %v811_v43 }
 0x261   : > { %v691_v8 = vpack.c.bf16 %v690_v4, %v690_v4 }
 0x262   : > { %v819_v50 = vunpack.i.h.s16 %v815_v45  ;;  %v821_v51 = vpack.i.b16 %v817_v46, %v817_v46  ;;  %v1362_v52 = vpack.i.b16 %v815_v45, %v815_v45  ;;  %v827_v53 = vperm.slane %v1361_v47, %v1867_v20 }
 0x263   : > { %v693_v10 = vrot.slane %v691_v8, 3 }
 0x264   : > { %v894_v12 = vpop.f32.mrf.mxu0  ;;  %v823_v57 = vpack.i.b16 %v819_v50, %v819_v50  ;;  %v831_v58 = vperm.slane %v821_v51, %v1867_v20  ;;  %v835_v59 = vperm.slane %v1362_v52, %v1867_v20 }
 0x265   : > { %v696_v13 = vsel %vm346_vm6, %v691_v8, %v693_v10  ;;  %v698_v14 = vsel %vm277_vm0, %v691_v8, %v693_v10  ;;  %1364 = vmatpush.msk.msra.mxu1 %vm318_vm4, %v894_v12 }
 0x266   : > { %v700_v15 = vrot.slane %v698_v14, 1  ;;  %v702_v16 = vunpack.i.h.s16 %v696_v13  ;;  %v1356_v17 = vpack.i.b16 %v696_v13, %v696_v13  ;;  %1365 = vmatmul.msk.f32.vlgmr.msra.gmra.mxu1 %vm314_vm5, %v1849_v56  ;;  %v839_v62 = vperm.slane %v823_v57, %v1867_v20 }
 0x267   : > { %1123 = vmatpush.bf16.msrb.mxu1 %v1818_v0  ;;  %v734_v0 = vld [vmem:[%s1879_s23 + $0x4] sm:$0x2] }
 0x268   : > { %v704_v21 = vunpack.i.h.s16 %v700_v15  ;;  %v706_v22 = vpack.i.b16 %v702_v16, %v702_v16  ;;  %v1357_v23 = vpack.i.b16 %v700_v15, %v700_v15  ;;  %v712_v24 = vperm.slane %v1356_v17, %v1867_v20 }
 0x26a   : > { %v708_v27 = vpack.i.b16 %v704_v21, %v704_v21  ;;  %v716_v28 = vperm.slane %v706_v22, %v1867_v20  ;;  %v720_v29 = vperm.slane %v1357_v23, %v1867_v20  ;;  %v732_v30 = vsel %vm2015_vm1, %v712_v24, %v731_v25  ;;  %v1078_v23 = vld [vmem:[%s1879_s23] sm:$0x8] }
 0x26b   : > { %733 = vst [vmem:[%s1879_s23] sm:$0x2] %v732_v30 }
 0x26c   : > { %v724_v32 = vperm.slane %v708_v27, %v1867_v20  ;;  %v735_v33 = vsel %vm2015_vm1, %v716_v28, %v734_v0  ;;  %v738_v34 = vsel %vm2015_vm1, %v720_v29, %v737_v31  ;;  %v896_v35 = vpop.f32.mrf.mxu0  ;;  %v1081_v29 = vld [vmem:[%s1879_s23 + $0x4] sm:$0x8]  ;;  %v1084_v31 = vld [vmem:[%s1879_s23 + $0x8] sm:$0x8] }
 0x26d   : > { %736 = vst [vmem:[%s1879_s23 + $0x4] sm:$0x2] %v735_v33 }
 0x26e   : > { %739 = vst [vmem:[%s1879_s23 + $0x8] sm:$0x2] %v738_v34  ;;  %v741_v37 = vsel %vm2015_vm1, %v724_v32, %v740_v36  ;;  %1373 = vmatmul.msk.bf16.vlgmr.msrb.gmra.mxu1 %vm292_vm3, %v1112_v26  ;;  %vm2045_vm3 = vmand %vm844_vm2, %vm845_vm7  ;;  %v1087_v32 = vld [vmem:[%s1879_s23 + $0xc] sm:$0x8] }
 0x26f   : > { %742 = vst [vmem:[%s1879_s23 + $0xc] sm:$0x2] %v741_v37  ;;  %v848_v60 = vsel %vm2045_vm3, %v827_v53, %v847_v49  ;;  %v851_v63 = vsel %vm2045_vm3, %v831_v58, %v850_v54  ;;  %v854_v1 = vsel %vm2045_vm3, %v835_v59, %v853_v55  ;;  %v857_v3 = vsel %vm2045_vm3, %v839_v62, %v856_v61 }
 0x270   : > { %849 = vst [vmem:[%s1879_s23] sm:$0x4] %v848_v60 }
 0x271   : > { %852 = vst [vmem:[%s1879_s23 + $0x4] sm:$0x4] %v851_v63 }
 0x272   : > { %855 = vst [vmem:[%s1879_s23 + $0x8] sm:$0x4] %v854_v1  ;;  %v1033_v4 = vpop.f32.mrf.mxu2 }
 0x273   : > { %858 = vst [vmem:[%s1879_s23 + $0xc] sm:$0x4] %v857_v3  ;;  %v1034_v5 = vadd.f32 %v1033_v4, %v1859_v2 }
 0x275   : > { %v1036_v6 = vmax.f32 %v1034_v5, 0.0 }
 0x277   : > { %v1037_v7 = vpack.c.bf16 %v1036_v6, %v1036_v6  ;;  %v962_v41 = vld [vmem:[%s1879_s23] sm:$0x4] }
 0x278   : > { %v965_v47 = vld [vmem:[%s1879_s23 + $0x4] sm:$0x4] }
 0x279   : > { %v1039_v9 = vrot.slane %v1037_v7, 3  ;;  %v968_v48 = vld [vmem:[%s1879_s23 + $0x8] sm:$0x4] }
 0x27a   : > { %v971_v53 = vld [vmem:[%s1879_s23 + $0xc] sm:$0x4] }
 0x27b   : > { %v1042_v11 = vsel %vm346_vm6, %v1037_v7, %v1039_v9  ;;  %v1044_v12 = vsel %vm277_vm0, %v1037_v7, %v1039_v9 }
 0x27c   : > { %v1046_v14 = vrot.slane %v1044_v12, 1  ;;  %v1048_v15 = vunpack.i.h.s16 %v1042_v11  ;;  %v1371_v16 = vpack.i.b16 %v1042_v11, %v1042_v11 }
 0x27e   : > { %v1050_v18 = vunpack.i.h.s16 %v1046_v14  ;;  %v1052_v19 = vpack.i.b16 %v1048_v15, %v1048_v15  ;;  %v1372_v21 = vpack.i.b16 %v1046_v14, %v1046_v14  ;;  %v1058_v24 = vperm.slane %v1371_v16, %v1867_v20 }
 0x280   : > { %v1054_v26 = vpack.i.b16 %v1050_v18, %v1050_v18  ;;  %v1062_v27 = vperm.slane %v1052_v19, %v1867_v20  ;;  %v1066_v28 = vperm.slane %v1372_v21, %v1867_v20  ;;  %v1079_v0 = vsel %vm2074_vm10, %v1058_v24, %v1078_v23 }
 0x281   : > { %1080 = vst [vmem:[%s1879_s23] sm:$0x8] %v1079_v0 }
 0x282   : > { %v1070_v35 = vperm.slane %v1054_v26, %v1867_v20  ;;  %v1082_v39 = vsel %vm2074_vm10, %v1062_v27, %v1081_v29  ;;  %v1085_v42 = vsel %vm2074_vm10, %v1066_v28, %v1084_v31 }
 0x283   : > { %1083 = vst [vmem:[%s1879_s23 + $0x4] sm:$0x8] %v1082_v39 }
 0x284   : > { %v1088_v43 = vsel %vm2074_vm10, %v1070_v35, %v1087_v32  ;;  %1086 = vst [vmem:[%s1879_s23 + $0x8] sm:$0x8] %v1085_v42 }
 0x285   : > { %1089 = vst [vmem:[%s1879_s23 + $0xc] sm:$0x8] %v1088_v43 }
 0x288   : > { %v1193_v12 = vld [vmem:[%s1879_s23] sm:$0x8] }
 0x28b   : > { %v1199_v18 = vld [vmem:[%s1879_s23 + $0x8] sm:$0x8] }
 0x28c   : > { %v1202_v23 = vld [vmem:[%s1879_s23 + $0xc] sm:$0x8] }
 0x2e3   : > { %v918_v8 = vpop.f32.mrf.mxu1 }
 0x2e4   : > { %v919_v10 = vadd.f32 %v918_v8, %v1859_v2 }
 0x2e6   : > { %v921_v13 = vmax.f32 %v919_v10, 0.0 }
 0x2e8   : > { %v922_v17 = vpack.c.bf16 %v921_v13, %v921_v13 }
 0x2ea   : > { %v924_v25 = vrot.slane %v922_v17, 3 }
 0x2eb   : > { %v1125_v30 = vpop.f32.mrf.mxu1 }
 0x2ec   : > { %v927_v33 = vsel %vm346_vm6, %v922_v17, %v924_v25  ;;  %v929_v34 = vsel %vm277_vm0, %v922_v17, %v924_v25  ;;  %1374 = vmatpush.msk.msrb.mxu0 %vm318_vm4, %v1125_v30  ;;  %vm1191_vm4 = vsmask.f32 7950  ;;  %v1196_v17 = vld [vmem:[%s1879_s23 + $0x4] sm:$0x8] }
 0x2ed   : > { %v931_v36 = vrot.slane %v929_v34, 1  ;;  %v933_v37 = vunpack.i.h.s16 %v927_v33  ;;  %v1366_v38 = vpack.i.b16 %v927_v33, %v927_v33  ;;  %1375 = vmatmul.msk.f32.vlgmr.msrb.gmra.mxu0 %vm314_vm5, %v1849_v56  ;;  %vm2138_vm5 = vmand %vm1075_vm8, %vm1191_vm4 }
 0x2ef   : > { %v935_v56 = vunpack.i.h.s16 %v931_v36  ;;  %v937_v44 = vpack.i.b16 %v933_v37, %v933_v37  ;;  %v1367_v45 = vpack.i.b16 %v931_v36, %v931_v36  ;;  %v943_v46 = vperm.slane %v1366_v38, %v1867_v20 }
 0x2f1   : > { %v939_v49 = vpack.i.b16 %v935_v56, %v935_v56  ;;  %v947_v50 = vperm.slane %v937_v44, %v1867_v20  ;;  %v951_v51 = vperm.slane %v1367_v45, %v1867_v20  ;;  %v963_v52 = vsel %vm2098_vm12, %v943_v46, %v962_v41 }
 0x2f2   : > { %964 = vst [vmem:[%s1879_s23] sm:$0x4] %v963_v52 }
 0x2f3   : > { %v955_v54 = vperm.slane %v939_v49, %v1867_v20  ;;  %v966_v55 = vsel %vm2098_vm12, %v947_v50, %v965_v47  ;;  %v969_v57 = vsel %vm2098_vm12, %v951_v51, %v968_v48  ;;  %v1127_v58 = vpop.f32.mrf.mxu1 }
 0x2f4   : > { %967 = vst [vmem:[%s1879_s23 + $0x4] sm:$0x4] %v966_v55 }
 0x2f5   : > { %970 = vst [vmem:[%s1879_s23 + $0x8] sm:$0x4] %v969_v57  ;;  %v972_v59 = vsel %vm2098_vm12, %v955_v54, %v971_v53 }
 0x2f6   : > { %973 = vst [vmem:[%s1879_s23 + $0xc] sm:$0x4] %v972_v59 }
 0x36a   : > { %v1149_v60 = vpop.f32.mrf.mxu0 }
 0x36b   : > { %v1150_v61 = vadd.f32 %v1149_v60, %v1859_v2 }
 0x36d   : > { %v1152_v62 = vmax.f32 %v1150_v61, 0.0 }
 0x36f   : > { %v1153_v63 = vpack.c.bf16 %v1152_v62, %v1152_v62 }
 0x371   : > { %v1155_v1 = vrot.slane %v1153_v63, 3 }
 0x373   : > { %v1158_v3 = vsel %vm346_vm6, %v1153_v63, %v1155_v1  ;;  %v1160_v4 = vsel %vm277_vm0, %v1153_v63, %v1155_v1 }
 0x374   : > { %v1162_v5 = vrot.slane %v1160_v4, 1  ;;  %v1164_v6 = vunpack.i.h.s16 %v1158_v3  ;;  %v1376_v7 = vpack.i.b16 %v1158_v3, %v1158_v3 }
 0x376   : > { %v1166_v8 = vunpack.i.h.s16 %v1162_v5  ;;  %v1168_v9 = vpack.i.b16 %v1164_v6, %v1164_v6  ;;  %v1377_v10 = vpack.i.b16 %v1162_v5, %v1162_v5  ;;  %v1174_v11 = vperm.slane %v1376_v7, %v1867_v20 }
 0x378   : > { %v1170_v13 = vpack.i.b16 %v1166_v8, %v1166_v8  ;;  %v1178_v14 = vperm.slane %v1168_v9, %v1867_v20  ;;  %v1182_v15 = vperm.slane %v1377_v10, %v1867_v20  ;;  %v1194_v16 = vsel %vm2138_vm5, %v1174_v11, %v1193_v12 }
 0x379   : > { %1195 = vst [vmem:[%s1879_s23] sm:$0x8] %v1194_v16 }
 0x37a   : > { %v1186_v19 = vperm.slane %v1170_v13, %v1867_v20  ;;  %v1197_v21 = vsel %vm2138_vm5, %v1178_v14, %v1196_v17  ;;  %v1200_v22 = vsel %vm2138_vm5, %v1182_v15, %v1199_v18 }
 0x37b   : > { %1198 = vst [vmem:[%s1879_s23 + $0x4] sm:$0x8] %v1197_v21 }
 0x37c   : > { %1201 = vst [vmem:[%s1879_s23 + $0x8] sm:$0x8] %v1200_v22  ;;  %v1203_v24 = vsel %vm2138_vm5, %v1186_v19, %v1202_v23 }
 0x37d   : > { %1204 = vst [vmem:[%s1879_s23 + $0xc] sm:$0x8] %v1203_v24 }
 0x37e   : > { %1574 = shalt.err (!%p1571_p13)
}
 0x37f   : > { %s1659_s13 = smov 64   ;;  %s1660_s12 = smov 128  }
 0x380   : > { %s1661_s23 = smov 4  }
 0x381   : > { %1393 = dma.vmem_to_hbm [thread:$0]  (%p1775_p3), %s2152_s10, 256, %s1223_s14, %s1206_s7, %s1659_s13, %s1660_s12, %s1661_s23  }
 0x382 PF: > { %s2251_s24 = sld [smem:[#allocation11_spill]]  ;;  %p1410_p0 = scmp.ge.s32.totalorder %s1649_s22, 2 }
 0x384   : > { %p1404_p5 = pnand %p1410_p0, %p1746_p6 }
 0x386   : > { %p1405_p7 = pneg %p1404_p5 }
 0x388   : > { %s1237_s30 = sand.u32 1, %s2251_s24  }
 0x389   : > { %s1238_s8 = scalar_lea.sflag [#allocation4], %s1237_s30 }
 0x38a   : > { %1616 = dma.done.wait (%p1405_p7), %s1238_s8, 256  }
 0x38b   : > { %1618 = vsyncadd (%p1405_p7), %s1238_s8, 4294967040  ;;  %s21_s22 = sadd.s32 1, %s1649_s22   ;;  %s2253_s26 = sld [smem:[#allocation13_spill]] }
 0x38c   : > { %p18_p9 = scmp.ge.s32.totalorder %s21_s22, 6   ;;  %s2254_s10 = sld [smem:[#allocation15_spill]] }
 0x38d   : > { %s2255_s15 = smov %s1625_s16  ;;  %s2256_s16 = smov %s1629_s17 }
 0x38e   : > { %s2257_s17 = smov %s1792_s1  ;;  %s2258_s18 = smov %s1641_s20 }
 0x38f   : > { %s2259_s19 = smov %s1645_s21  ;;  %20 = sbr.rel (!%p18_p9) target bundleno = 11 (0xb), region = 85 }
 0x391   : > { %s2260_s20 = smov %s2253_s26 }
 0x392   : > { %s2261_s21 = smov %s2254_s10 }
 0x394   :  { %1244 = vsyncpa [#allocation3], 1 }
 0x395   :  { %1246 = vsyncpa [#allocation3 + $0x1], 1 }
 0x396   :  { %1247 = vsyncpa [#allocation6], 1 }
 0x397   :  { %1248 = vsyncpa [#allocation4], 1 }
 0x398   :  { %1250 = vsyncpa [#allocation4 + $0x1], 1 }

</bundles_post_ra>
